<compile_context>
chip_gen: v7x
topology: tpu7x:2x2x1
jax: 0.10.0
libtpu: 0.0.40
codegen_flags: <defaults>
</compile_context>

<pallas_src>
import jax
import jax.numpy as jnp
import numpy as np
from jax.experimental import pallas as pl
from jax.experimental.pallas import tpu as pltpu

T = 200  # number of linspace samples of the universe, as in the torch module


class Universe:
    """Deterministic stand-in for pyanfis Universe: monotonic sigmoid membership functions."""

    def __init__(self, u_min: float, u_max: float, num_functions: int):
        self.min = float(u_min)
        self.max = float(u_max)
        centers = jnp.linspace(u_min + 1.0, u_max - 1.0, num_functions)
        slopes = jnp.linspace(0.8, 2.0, num_functions)
        self.functions = {
            f"mf_{k}": (lambda x, c=centers[k], s=slopes[k]:
                        1.0 / (1.0 + jnp.exp(-s * (x - c))))
            for k in range(num_functions)
        }


def tsukamoto_kernel(f_ref, rulest_ref, fout_ref, xm_ref, params_ref, out_ref):
    f = f_ref[...]              # (R, J)       firing strengths, rows = flattened (B, I)
    fout = fout_ref[...]        # (K, T_PAD)   sampled output membership functions (0-padded)
    x_row = xm_ref[0:1, :]      # (1, T_PAD)   universe samples (0 in padded lanes)
    m_row = xm_ref[1:2, :]      # (1, T_PAD)   valid-lane mask (1 for t < T, else 0)

    K = fout.shape[0]

    # max_{j,k} min(fout[k,t], f[i,j]*rules[j,k])
    #   == max_k min(fout[k,t], max_j f[i,j]*rules[j,k])   (min(c,.) is monotone)
    # Unrolled K loop: running (R, T_PAD) max on the VPU, no (R, K, T) intermediate,
    # no K-on-lanes layout.
    y_max = None
    for k in range(K):
        rk = rulest_ref[k:k + 1, :]                        # (1, J)   rules^T row k
        wk = jnp.max(f * rk, axis=1, keepdims=True)        # (R, 1)   max_j intersection
        ck = jnp.minimum(fout[k:k + 1, :], wk)             # (R, T_PAD)
        y_max = ck if y_max is None else jnp.maximum(y_max, ck)

    # Centre-of-gravity defuzzification; masked lanes contribute exactly nothing.
    # (At R=B*I=16 rows these two lane reductions are cheap; for hundreds of rows this
    #  pair could become a single MXU dot against a (T_PAD, 2) [x, mask] matrix.)
    num = jnp.sum(y_max * x_row, axis=1, keepdims=True)    # (R, 1)
    den = jnp.sum(y_max * m_row, axis=1, keepdims=True)    # (R, 1)
    out = jnp.nan_to_num(num / den, nan=0.0)               # exact divide keeps 0/0 -> 0

    # Affine rescale with precomputed scalars: out*scale + bias
    out = out * params_ref[0] + params_ref[1]

    # Lane-dense, unmasked store: broadcast the per-row result across 128 lanes.
    out_ref[...] = jnp.broadcast_to(out, out_ref.shape).astype(out_ref.dtype)


def tsukamoto_forward(f, rules, universe):
    B, I, J = f.shape
    J2, K = rules.shape
    assert J == J2
    R = B * I
    T_PAD = 128 * pl.cdiv(T, 128)  # 200 -> 256 lanes

    # --- glue: sample the universe membership functions & global center statistics ---
    x = jnp.linspace(universe.min, universe.max, T, dtype=jnp.float32)       # (T,)
    f_outputs = jnp.stack([fn(x) for fn in universe.functions.values()])     # (K, T)
    f_outputs = f_outputs.astype(jnp.float32)
    assert f_outputs.shape == (K, T)

    c_num = jnp.sum(x * f_outputs, axis=-1)
    c_den = jnp.sum(f_outputs, axis=-1)
    centers = jnp.nan_to_num(c_num / c_den, nan=0.0)
    max_f = jnp.max(centers)
    min_f = jnp.min(centers)
    scale = (universe.max - universe.min) / (max_f - min_f)
    bias = universe.max - scale * max_f
    params = jnp.stack([scale, bias]).astype(jnp.float32)                    # (2,) SMEM scalars

    # Lane-pad the universe axis; padded x entries are 0 and padded lanes are masked,
    # so the CoG numerator/denominator pick up no spurious mass.
    pad = T_PAD - T
    fout_p = jnp.pad(f_outputs, ((0, 0), (0, pad)))                          # (K, T_PAD)
    x_p = jnp.pad(x, (0, pad))                                               # (T_PAD,)
    mask = jnp.pad(jnp.ones((T,), jnp.float32), (0, pad))                    # (T_PAD,)
    xm = jnp.stack([x_p, mask], axis=0)                                      # (2, T_PAD)

    f2 = f.reshape(R, J).astype(jnp.float32)                                 # (R, J) lane-dense rows
    rulest = rules.T.astype(jnp.float32)                                     # (K, J)

    out_slab = pl.pallas_call(
        tsukamoto_kernel,
        out_shape=jax.ShapeDtypeStruct((R, 128), jnp.float32),
        in_specs=[
            pl.BlockSpec(memory_space=pltpu.MemorySpace.VMEM),   # f2      (R, J)
            pl.BlockSpec(memory_space=pltpu.MemorySpace.VMEM),   # rules^T (K, J)
            pl.BlockSpec(memory_space=pltpu.MemorySpace.VMEM),   # fout    (K, T_PAD)
            pl.BlockSpec(memory_space=pltpu.MemorySpace.VMEM),   # [x; mask] (2, T_PAD)
            pl.BlockSpec(memory_space=pltpu.MemorySpace.SMEM),   # [scale, bias]
        ],
        out_specs=pl.BlockSpec(memory_space=pltpu.MemorySpace.VMEM),
    )(f2, rulest, fout_p, xm, params)

    return out_slab[:, 0].reshape(B, I, 1)


def tsukamoto_ref(f, rules, universe):
    """Literal JAX transcription of the torch forward, for validation."""
    x = jnp.linspace(universe.min, universe.max, T, dtype=jnp.float32)
    f_outputs = jnp.stack([fn(x) for fn in universe.functions.values()])
    f_intersected = jnp.einsum('bij,jk->ibjk', f, rules)
    f_transposed = jnp.transpose(f_intersected, (1, 0, 2, 3))[..., None]
    y = jnp.minimum(f_outputs[None, None], f_transposed)
    y_max = jnp.max(y, axis=(2, 3))
    numerator = jnp.sum(x * y_max, axis=-1)
    denominator = jnp.sum(y_max, axis=-1)
    out = jnp.nan_to_num(numerator / denominator, nan=0.0)[..., None]
    c_num = jnp.sum(x * f_outputs, axis=-1)
    c_den = jnp.sum(f_outputs, axis=-1)
    centers = jnp.nan_to_num(c_num / c_den, nan=0.0)
    max_f = jnp.max(centers)
    min_f = jnp.min(centers)
    out = (universe.max - universe.min) / (max_f - min_f) * (out - max_f) + universe.max
    return out


if __name__ == "__main__":
    B, I, J, K = 2, 8, 16, 4  # batch, inputs, rules, output membership functions

    key = jax.random.PRNGKey(0)
    f = jax.random.uniform(key, (B, I, J), dtype=jnp.float32)       # firing strengths in [0, 1]
    # deterministic rule -> output-MF assignment (one-hot), as ANFIS rule matrices typically are
    rules = jnp.eye(K, dtype=jnp.float32)[jnp.arange(J) % K]        # (J, K)

    universe = Universe(0.0, 10.0, K)

    out = tsukamoto_forward(f, rules, universe)
    jax.block_until_ready(out)

    ref = tsukamoto_ref(f, rules, universe)
    assert out.shape == (B, I, 1)
    np.testing.assert_allclose(np.asarray(out), np.asarray(ref), rtol=1e-5, atol=2e-5)

    print("KERNEL_OK")
</pallas_src>

<mosaic_0001>
module attributes {stable_mosaic.version = 11 : i64} {
  func.func @tsukamoto_kernel(%arg0: memref<16x16xf32, #tpu.memory_space<vmem>>, %arg1: memref<4x16xf32, #tpu.memory_space<vmem>>, %arg2: memref<4x256xf32, #tpu.memory_space<vmem>>, %arg3: memref<2x256xf32, #tpu.memory_space<vmem>>, %arg4: memref<2xf32, #tpu.memory_space<smem>>, %arg5: memref<16x128xf32, #tpu.memory_space<vmem>>) attributes {dimension_semantics = [], scalar_prefetch = 0 : i64, scratch_operands = 0 : i64, tpu.core_type = #tpu.core_type<tc>} {
    %c0 = arith.constant 0 : index
    %c0_0 = arith.constant 0 : index
    %0 = vector.load %arg0[%c0, %c0_0] : memref<16x16xf32, #tpu.memory_space<vmem>>, vector<16x16xf32>
    %c0_1 = arith.constant 0 : index
    %c0_2 = arith.constant 0 : index
    %1 = vector.load %arg2[%c0_1, %c0_2] : memref<4x256xf32, #tpu.memory_space<vmem>>, vector<4x256xf32>
    %c0_3 = arith.constant 0 : index
    %c0_4 = arith.constant 0 : index
    %2 = vector.load %arg3[%c0_3, %c0_4] : memref<2x256xf32, #tpu.memory_space<vmem>>, vector<1x256xf32>
    %c1 = arith.constant 1 : index
    %c0_5 = arith.constant 0 : index
    %3 = vector.load %arg3[%c1, %c0_5] : memref<2x256xf32, #tpu.memory_space<vmem>>, vector<1x256xf32>
    %c0_6 = arith.constant 0 : index
    %c0_7 = arith.constant 0 : index
    %4 = vector.load %arg1[%c0_6, %c0_7] : memref<4x16xf32, #tpu.memory_space<vmem>>, vector<1x16xf32>
    %5 = vector.broadcast %4 : vector<1x16xf32> to vector<16x16xf32>
    %6 = arith.mulf %0, %5 : vector<16x16xf32>
    %cst = arith.constant dense<0xFF800000> : vector<16xf32>
    %7 = vector.multi_reduction <maximumf>, %6, %cst [1] : vector<16x16xf32> to vector<16xf32>
    %8 = vector.shape_cast %7 : vector<16xf32> to vector<16x1xf32>
    %9 = vector.extract_strided_slice %1 {offsets = [0, 0], sizes = [1, 256], strides = [1, 1]} : vector<4x256xf32> to vector<1x256xf32>
    %10 = vector.broadcast %9 : vector<1x256xf32> to vector<16x256xf32>
    %11 = vector.broadcast %8 : vector<16x1xf32> to vector<16x256xf32>
    %12 = arith.minimumf %10, %11 : vector<16x256xf32>
    %c1_8 = arith.constant 1 : index
    %c0_9 = arith.constant 0 : index
    %13 = vector.load %arg1[%c1_8, %c0_9] : memref<4x16xf32, #tpu.memory_space<vmem>>, vector<1x16xf32>
    %14 = vector.broadcast %13 : vector<1x16xf32> to vector<16x16xf32>
    %15 = arith.mulf %0, %14 : vector<16x16xf32>
    %cst_10 = arith.constant dense<0xFF800000> : vector<16xf32>
    %16 = vector.multi_reduction <maximumf>, %15, %cst_10 [1] : vector<16x16xf32> to vector<16xf32>
    %17 = vector.shape_cast %16 : vector<16xf32> to vector<16x1xf32>
    %18 = vector.extract_strided_slice %1 {offsets = [1, 0], sizes = [1, 256], strides = [1, 1]} : vector<4x256xf32> to vector<1x256xf32>
    %19 = vector.broadcast %18 : vector<1x256xf32> to vector<16x256xf32>
    %20 = vector.broadcast %17 : vector<16x1xf32> to vector<16x256xf32>
    %21 = arith.minimumf %19, %20 : vector<16x256xf32>
    %22 = arith.maximumf %12, %21 : vector<16x256xf32>
    %c2 = arith.constant 2 : index
    %c0_11 = arith.constant 0 : index
    %23 = vector.load %arg1[%c2, %c0_11] : memref<4x16xf32, #tpu.memory_space<vmem>>, vector<1x16xf32>
    %24 = vector.broadcast %23 : vector<1x16xf32> to vector<16x16xf32>
    %25 = arith.mulf %0, %24 : vector<16x16xf32>
    %cst_12 = arith.constant dense<0xFF800000> : vector<16xf32>
    %26 = vector.multi_reduction <maximumf>, %25, %cst_12 [1] : vector<16x16xf32> to vector<16xf32>
    %27 = vector.shape_cast %26 : vector<16xf32> to vector<16x1xf32>
    %28 = vector.extract_strided_slice %1 {offsets = [2, 0], sizes = [1, 256], strides = [1, 1]} : vector<4x256xf32> to vector<1x256xf32>
    %29 = vector.broadcast %28 : vector<1x256xf32> to vector<16x256xf32>
    %30 = vector.broadcast %27 : vector<16x1xf32> to vector<16x256xf32>
    %31 = arith.minimumf %29, %30 : vector<16x256xf32>
    %32 = arith.maximumf %22, %31 : vector<16x256xf32>
    %c3 = arith.constant 3 : index
    %c0_13 = arith.constant 0 : index
    %33 = vector.load %arg1[%c3, %c0_13] : memref<4x16xf32, #tpu.memory_space<vmem>>, vector<1x16xf32>
    %34 = vector.broadcast %33 : vector<1x16xf32> to vector<16x16xf32>
    %35 = arith.mulf %0, %34 : vector<16x16xf32>
    %cst_14 = arith.constant dense<0xFF800000> : vector<16xf32>
    %36 = vector.multi_reduction <maximumf>, %35, %cst_14 [1] : vector<16x16xf32> to vector<16xf32>
    %37 = vector.shape_cast %36 : vector<16xf32> to vector<16x1xf32>
    %38 = vector.extract_strided_slice %1 {offsets = [3, 0], sizes = [1, 256], strides = [1, 1]} : vector<4x256xf32> to vector<1x256xf32>
    %39 = vector.broadcast %38 : vector<1x256xf32> to vector<16x256xf32>
    %40 = vector.broadcast %37 : vector<16x1xf32> to vector<16x256xf32>
    %41 = arith.minimumf %39, %40 : vector<16x256xf32>
    %42 = arith.maximumf %32, %41 : vector<16x256xf32>
    %43 = vector.broadcast %2 : vector<1x256xf32> to vector<16x256xf32>
    %44 = arith.mulf %42, %43 : vector<16x256xf32>
    %cst_15 = arith.constant dense<0.000000e+00> : vector<16xf32>
    %45 = vector.multi_reduction <add>, %44, %cst_15 [1] : vector<16x256xf32> to vector<16xf32>
    %46 = vector.shape_cast %45 : vector<16xf32> to vector<16x1xf32>
    %47 = vector.broadcast %3 : vector<1x256xf32> to vector<16x256xf32>
    %48 = arith.mulf %42, %47 : vector<16x256xf32>
    %cst_16 = arith.constant dense<0.000000e+00> : vector<16xf32>
    %49 = vector.multi_reduction <add>, %48, %cst_16 [1] : vector<16x256xf32> to vector<16xf32>
    %50 = vector.shape_cast %49 : vector<16xf32> to vector<16x1xf32>
    %51 = arith.divf %46, %50 : vector<16x1xf32>
    %cst_17 = arith.constant 0.000000e+00 : f32
    %52 = arith.cmpf one, %51, %51 : vector<16x1xf32>
    %53 = vector.broadcast %cst_17 : f32 to vector<16x1xf32>
    %54 = arith.select %52, %53, %51 : vector<16x1xi1>, vector<16x1xf32>
    %cst_18 = arith.constant 0x7F800000 : f32
    %55 = vector.broadcast %cst_18 : f32 to vector<16x1xf32>
    %56 = arith.cmpf oeq, %54, %55 : vector<16x1xf32>
    %cst_19 = arith.constant 3.40282347E+38 : f32
    %57 = vector.broadcast %cst_19 : f32 to vector<16x1xf32>
    %58 = arith.select %56, %57, %54 : vector<16x1xi1>, vector<16x1xf32>
    %cst_20 = arith.constant 0xFF800000 : f32
    %59 = vector.broadcast %cst_20 : f32 to vector<16x1xf32>
    %60 = arith.cmpf oeq, %58, %59 : vector<16x1xf32>
    %cst_21 = arith.constant -3.40282347E+38 : f32
    %61 = vector.broadcast %cst_21 : f32 to vector<16x1xf32>
    %62 = arith.select %60, %61, %58 : vector<16x1xi1>, vector<16x1xf32>
    %c0_22 = arith.constant 0 : index
    %63 = memref.load %arg4[%c0_22] : memref<2xf32, #tpu.memory_space<smem>>
    %64 = vector.broadcast %63 : f32 to vector<16x1xf32>
    %65 = arith.mulf %62, %64 : vector<16x1xf32>
    %c1_23 = arith.constant 1 : index
    %66 = memref.load %arg4[%c1_23] : memref<2xf32, #tpu.memory_space<smem>>
    %67 = vector.broadcast %66 : f32 to vector<16x1xf32>
    %68 = arith.addf %65, %67 : vector<16x1xf32>
    %69 = vector.shape_cast %68 : vector<16x1xf32> to vector<16x1xf32>
    %70 = vector.broadcast %69 : vector<16x1xf32> to vector<16x128xf32>
    %c0_24 = arith.constant 0 : index
    %c0_25 = arith.constant 0 : index
    %71 = vector.load %arg5[%c0_24, %c0_25] : memref<16x128xf32, #tpu.memory_space<vmem>>, vector<16x128xf32>
    tpu.vector_store %arg5[%c0_24, %c0_25], %70 {strides = array<i32>} : memref<16x128xf32, #tpu.memory_space<vmem>>, vector<16x128xf32>,
    return
  }
}

</mosaic_0001>

<bundles_post_ra>
// kernel: tpu_custom_call.1
= control target key start
LH: loop header
LB: loop body
LE: loop exit
PB: predicated region body
PF: predicated region fallthrough
CT: control target
= control target key end

     0   :  { %10 = vsyncpa [#allocation3], 0  ;;  %s558_s0 = inlined_call_operand.hbm [shape: f32[16,16], index: 0, kind: input, shape index: {}]   ;;  %s559_s1 = inlined_call_operand.hbm [shape: f32[4,16], index: 1, kind: input, shape index: {}]   ;;  %s560_s2 = inlined_call_operand.hbm [shape: f32[4,256], index: 2, kind: input, shape index: {}]   ;;  %s561_s3 = inlined_call_operand.vmem [shape: f32[2,256], index: 3, kind: input, shape index: {}]   ;;  %s562_s4 = inlined_call_operand.vmem [shape: f32[2], index: 4, kind: input, shape index: {}]   ;;  %s563_s5 = inlined_call_operand.hbm [shape: f32[16,128], index: 5, kind: output, shape index: {}]  }
   0x1   :  { %11 = vsyncpa [#allocation7], 0 }
   0x2   :  { %12 = vsyncpa [#allocation5], 0 }
   0x3   :  { %13 = vsyncpa [#allocation4], 0  ;;  %s443_s18 = smov [#allocation6]   ;;  %s444_s20 = smov [#allocation2]  }
   0x4   :  { %s32_s19 = sshll.u32 %s443_s18, 4  ;;  %s19_s21 = sshll.u32 %s444_s20, 4  ;;  %s33_s19 = int_to_ptr.vmem [resolvable:$true] %s32_s19  ;;  %s480_s21 = int_to_ptr.vmem [resolvable:$true] %s19_s21 }
   0x5   :  { %s335_s24 = scalar_lea.hbm %s559_s1, 64 }
   0x6   :  { %p336_p0 = scmp.ne.s32.totalorder %s559_s1, %s335_s24  ;;  %p339_p1 = scmp.lt.u32.totalorder %s335_s24, %s559_s1 }
   0x8   :  { %p341_p2 = pnand %p339_p1, %p336_p0 }
   0xa   :  { %344 = shalt.err (!%p341_p2)
}
   0xb   :  { %s345_s29 = scalar_lea.vmem %s33_s19, 64  ;;  %p350_p4 = scmp.lt.s32.totalorder %s33_s19, %s33_s19 }
   0xc   :  { %p346_p3 = scmp.ne.s32.totalorder %s33_s19, %s345_s29  ;;  %p351_p5 = scmp.lt.s32.totalorder %s345_s29, %s345_s29 }
   0xe   :  { %p352_p6 = por %p351_p5, %p350_p4 }
  0x10   :  { %p353_p7 = pnand %p352_p6, %p346_p3 }
  0x12   :  { %356 = shalt.err (!%p353_p7)
}
  0x13   :  { %35 = dma.hbm_to_vmem [thread:$0]  %s559_s1, 64, %s33_s19, [#allocation7]  }
  0x14   :  { %s357_s9 = scalar_lea.hbm %s558_s0, 256 }
  0x15   :  { %p358_p8 = scmp.ne.s32.totalorder %s558_s0, %s357_s9  ;;  %p361_p9 = scmp.lt.u32.totalorder %s357_s9, %s558_s0 }
  0x17   :  { %p363_p10 = pnand %p361_p9, %p358_p8 }
  0x19   :  { %366 = shalt.err (!%p363_p10)
}
  0x1a   :  { %s367_s14 = scalar_lea.vmem %s480_s21, 256  ;;  %p372_p12 = scmp.lt.s32.totalorder %s480_s21, %s480_s21 }
  0x1b   :  { %p368_p11 = scmp.ne.s32.totalorder %s480_s21, %s367_s14  ;;  %p373_p13 = scmp.lt.s32.totalorder %s367_s14, %s367_s14 }
  0x1d   :  { %p374_p0 = por %p373_p13, %p372_p12 }
  0x1f   :  { %p375_p1 = pnand %p374_p0, %p368_p11 }
  0x21   :  { %378 = shalt.err (!%p375_p1)
}
  0x22   :  { %s445_s1 = smov 128   ;;  %s446_s15 = smov 8  }
  0x23   :  { %25 = dma.hbm_to_vmem [thread:$0]  %s558_s0, 256, %s480_s21, [#allocation3], %s445_s1, %s445_s1, %s446_s15  }
  0x24   :  { %s54_s20 = sshll.u32 %s562_s4, 4  ;;  %s447_s22 = smov [#allocation8]   ;;  %s55_s20 = int_to_ptr.vmem [resolvable:$true] %s54_s20 }
  0x25   :  { %s42_s23 = sshll.u32 %s447_s22, 4  ;;  %s379_s26 = scalar_lea.hbm %s560_s2, 128  ;;  %s43_s23 = int_to_ptr.vmem [resolvable:$true] %s42_s23 }
  0x26   :  { %p380_p2 = scmp.ne.s32.totalorder %s560_s2, %s379_s26  ;;  %p383_p3 = scmp.lt.u32.totalorder %s379_s26, %s560_s2 }
  0x28   :  { %p385_p4 = pnand %p383_p3, %p380_p2 }
  0x2a   :  { %388 = shalt.err (!%p385_p4)
}
  0x2b   :  { %s389_s0 = scalar_lea.vmem %s43_s23, 128  ;;  %p394_p6 = scmp.lt.s32.totalorder %s43_s23, %s43_s23 }
  0x2c   :  { %p390_p5 = scmp.ne.s32.totalorder %s43_s23, %s389_s0  ;;  %p395_p7 = scmp.lt.s32.totalorder %s389_s0, %s389_s0 }
  0x2e   :  { %p396_p8 = por %p395_p7, %p394_p6 }
  0x30   :  { %p397_p9 = pnand %p396_p8, %p390_p5 }
  0x32   :  { %400 = shalt.err (!%p397_p9)
}
  0x33   :  { %45 = dma.hbm_to_vmem [thread:$0]  %s560_s2, 128, %s43_s23, [#allocation7]  }
  0x34   :  { %s401_s6 = scalar_lea.vmem %s55_s20, 16  ;;  %p406_p11 = scmp.lt.s32.totalorder %s55_s20, %s55_s20 }
  0x35   :  { %p402_p10 = scmp.ne.s32.totalorder %s55_s20, %s401_s6  ;;  %p407_p12 = scmp.lt.s32.totalorder %s401_s6, %s401_s6 }
  0x37   :  { %p408_p13 = por %p407_p12, %p406_p11 }
  0x39   :  { %p409_p0 = pnand %p408_p13, %p402_p10 }
  0x3b   :  { %412 = shalt.err (!%p409_p0)
}
  0x3c   :  { %s448_s7 = smov [#allocation9]  }
  0x3d   :  { %57 = dma.vmem_to_smem %s55_s20, 16, %s448_s7, [#allocation5]  }
  0x3e   :  { %435 = dma.done.wait [#allocation3], 256  }
  0x3f   :  { %436 = vsyncadd [#allocation3], 4294967040 }
  0x40   :  { %437 = dma.done.wait [#allocation7], 192  }
  0x41   :  { %438 = vsyncadd [#allocation7], 4294967104 }
  0x42   :  { %439 = dma.done.wait [#allocation5], 16  }
  0x43   :  { %440 = vsyncadd [#allocation5], 4294967280 }
  0x44   :  { %70 = sfence }
  0x45   :  { %v71_v0 = vld [vmem:[#allocation2] sm:$0xff]  ;;  %vm84_vm0 = vcmask 130048   ;;  %v320_v1 = vld [vmem:[#allocation6 + $0x1] ss:$0 sm:$0xff]  ;;  %v319_v2 = vld [vmem:[#allocation6] ss:$0 sm:$0xff]  ;;  %v92_v22 = vlaneseq }
  0x46   :  { %v119_v3 = vmul.f32 %v320_v1, %v71_v0  ;;  %v82_v4 = vmul.f32 %v319_v2, %v71_v0  ;;  %v72_v5 = vld [vmem:[#allocation2 + $0x8] sm:$0xff]  ;;  %v321_v8 = vld [vmem:[#allocation6 + $0x2] ss:$0 sm:$0xff]  ;;  %v322_v15 = vld [vmem:[#allocation6 + $0x3] ss:$0 sm:$0xff]  ;;  %s323_s11 = sld [smem:[#allocation9 + $0x1]] }
  0x47   :  { %v120_v6 = vmul.f32 %v320_v1, %v72_v5  ;;  %v83_v7 = vmul.f32 %v319_v2, %v72_v5  ;;  %v159_v13 = vmul.f32 %v321_v8, %v72_v5  ;;  %v158_v14 = vmul.f32 %v321_v8, %v71_v0  ;;  %v73_v28 = vld [vmem:[#allocation8] sm:$0xff]  ;;  %v318_v63 = vld [vmem:[%s561_s3 + $0x1] ss:$2 sm:$0x3]  ;;  %s449_s12 = smov [#allocation10]  }
  0x48   :  { %v121_v9 = vsel %vm84_vm0, %v119_v3, -inf  ;;  %v85_v10 = vsel %vm84_vm0, %v82_v4, -inf  ;;  %v198_v18 = vmul.f32 %v322_v15, %v72_v5  ;;  %v197_v19 = vmul.f32 %v322_v15, %v71_v0  ;;  %s304_s13 = sshll.u32 %s449_s12, 4  ;;  %s305_s13 = int_to_ptr.vmem [resolvable:$true] %s304_s13 }
  0x49   :  { %122 = vmax.xlane.f32.xlu1 %v121_v9  ;;  %86 = vmax.xlane.f32.xlu0 %v85_v10  ;;  %v124_v11 = vsel %vm84_vm0, %v120_v6, -inf  ;;  %v88_v12 = vsel %vm84_vm0, %v83_v7, -inf  ;;  %v163_v16 = vsel %vm84_vm0, %v159_v13, -inf  ;;  %v160_v17 = vsel %vm84_vm0, %v158_v14, -inf  ;;  %s413_s14 = scalar_lea.vmem %s305_s13, 256  ;;  %p418_p2 = scmp.lt.s32.totalorder %s305_s13, %s305_s13 }
  0x4a   :  { %v202_v20 = vsel %vm84_vm0, %v198_v18, -inf  ;;  %v199_v21 = vsel %vm84_vm0, %v197_v19, -inf  ;;  %v93_v23 = vshrl.u32 %v92_v22, 7  ;;  %v74_v10 = vld [vmem:[%s561_s3] ss:$2 sm:$0x3]  ;;  %p414_p1 = scmp.ne.s32.totalorder %s305_s13, %s413_s14  ;;  %p419_p3 = scmp.lt.s32.totalorder %s413_s14, %s413_s14 }
  0x4b   :  { %s289_s3 = sld [smem:[#allocation9]] }
  0x4c   :  { %v129_v24 = vsub.s32 1, %v93_v23  ;;  %v133_v25 = vsub.s32 5, %v93_v23  ;;  %v94_v26 = vsub.s32 0, %v93_v23  ;;  %v98_v27 = vsub.s32 4, %v93_v23  ;;  %p420_p4 = por %p419_p3, %p418_p2 }
  0x4d   :  { %125 = vmax.xlane.f32.xlu1 %v124_v11  ;;  %89 = vmax.xlane.f32.xlu0 %v88_v12  ;;  %v168_v29 = vsub.s32 2, %v93_v23  ;;  %v172_v30 = vsub.s32 6, %v93_v23  ;;  %v207_v39 = vsub.s32 3, %v93_v23  ;;  %v211_v40 = vsub.s32 7, %v93_v23 }
  0x4e   :  { %v130_v31 = vrot.slane %v73_v28, %v129_v24  ;;  %v134_v32 = vrot.slane %v73_v28, %v133_v25  ;;  %v95_v33 = vrot.slane %v73_v28, %v94_v26  ;;  %v99_v34 = vrot.slane %v73_v28, %v98_v27  ;;  %p421_p5 = pnand %p420_p4, %p414_p1 }
  0x4f   :  { %v169_v37 = vrot.slane %v73_v28, %v168_v29  ;;  %v173_v38 = vrot.slane %v73_v28, %v172_v30  ;;  %v208_v49 = vrot.slane %v73_v28, %v207_v39  ;;  %v212_v50 = vrot.slane %v73_v28, %v211_v40 }
  0x50   :  { %v140_v41 = vrot.slane %v130_v31, %v129_v24  ;;  %v144_v42 = vrot.slane %v134_v32, %v129_v24  ;;  %v105_v43 = vrot.slane %v95_v33, %v94_v26  ;;  %v109_v44 = vrot.slane %v99_v34, %v94_v26 }
  0x51   :  { %164 = vmax.xlane.f32.xlu1 %v163_v16  ;;  %161 = vmax.xlane.f32.xlu0 %v160_v17  ;;  %v179_v47 = vrot.slane %v169_v37, %v168_v29  ;;  %v183_v48 = vrot.slane %v173_v38, %v168_v29  ;;  %v218_v61 = vrot.slane %v208_v49, %v207_v39 }
  0x52   :  { %v222_v62 = vrot.slane %v212_v50, %v207_v39  ;;  %v256_v8 = vrot.slane %v318_v63, %v94_v26  ;;  %v260_v9 = vrot.slane %v318_v63, %v129_v24  ;;  %v239_v22 = vrot.slane %v74_v10, %v129_v24 }
  0x53   :  { %v290_v50 = vstv %s289_s3 }
  0x55   :  { %203 = vmax.xlane.f32.xlu1 %v202_v20  ;;  %200 = vmax.xlane.f32.xlu0 %v199_v21  ;;  %v235_v21 = vrot.slane %v74_v10, %v94_v26 }
  0xd6   :  { %v123_v35 = vpop.xlane.xlu1 %122  ;;  %v87_v36 = vpop.xlane.xlu0 %86 }
  0xd7   :  { %v145_v51 = vmin.f32 %v140_v41, %v123_v35  ;;  %v146_v52 = vmin.f32 %v144_v42, %v123_v35  ;;  %v110_v53 = vmin.f32 %v105_v43, %v87_v36  ;;  %v111_v54 = vmin.f32 %v109_v44, %v87_v36 }
  0xd9   :  { %v149_v4 = vmax.f32 %v110_v53, %v145_v51  ;;  %v150_v5 = vmax.f32 %v111_v54, %v146_v52  ;;  %v294_v53 = vstv %s323_s11 }
  0xda   :  { %v126_v45 = vpop.xlane.xlu1 %125  ;;  %v90_v46 = vpop.xlane.xlu0 %89 }
  0xdb   :  { %v147_v55 = vmin.f32 %v140_v41, %v126_v45  ;;  %v148_v56 = vmin.f32 %v144_v42, %v126_v45  ;;  %v112_v57 = vmin.f32 %v105_v43, %v90_v46  ;;  %v113_v58 = vmin.f32 %v109_v44, %v90_v46 }
  0xdd   :  { %v151_v6 = vmax.f32 %v112_v57, %v147_v55  ;;  %v152_v7 = vmax.f32 %v113_v58, %v148_v56 }
  0xde   :  { %v165_v59 = vpop.xlane.xlu1 %164  ;;  %v162_v60 = vpop.xlane.xlu0 %161 }
  0xdf   :  { %v186_v0 = vmin.f32 %v179_v47, %v165_v59  ;;  %v187_v1 = vmin.f32 %v183_v48, %v165_v59  ;;  %v184_v2 = vmin.f32 %v179_v47, %v162_v60  ;;  %v185_v3 = vmin.f32 %v183_v48, %v162_v60 }
  0xe1   :  { %v190_v11 = vmax.f32 %v151_v6, %v186_v0  ;;  %v191_v12 = vmax.f32 %v152_v7, %v187_v1  ;;  %v188_v13 = vmax.f32 %v149_v4, %v184_v2  ;;  %v189_v14 = vmax.f32 %v150_v5, %v185_v3 }
  0xe2   :  { %v204_v15 = vpop.xlane.xlu1 %203  ;;  %v201_v16 = vpop.xlane.xlu0 %200 }
  0xe3   :  { %v225_v17 = vmin.f32 %v218_v61, %v204_v15  ;;  %v226_v18 = vmin.f32 %v222_v62, %v204_v15  ;;  %v223_v19 = vmin.f32 %v218_v61, %v201_v16  ;;  %v224_v20 = vmin.f32 %v222_v62, %v201_v16 }
  0xe5   :  { %v229_v23 = vmax.f32 %v190_v11, %v225_v17  ;;  %v230_v25 = vmax.f32 %v191_v12, %v226_v18  ;;  %v227_v27 = vmax.f32 %v188_v13, %v223_v19  ;;  %v228_v28 = vmax.f32 %v189_v14, %v224_v20 }
  0xe7   :  { %v265_v29 = vmul.f32 %v256_v8, %v229_v23  ;;  %v266_v30 = vmul.f32 %v260_v9, %v230_v25  ;;  %v263_v31 = vmul.f32 %v256_v8, %v227_v27  ;;  %v264_v32 = vmul.f32 %v260_v9, %v228_v28 }
  0xe8   :  { %v244_v33 = vmul.f32 %v235_v21, %v229_v23  ;;  %v245_v34 = vmul.f32 %v239_v22, %v230_v25  ;;  %v242_v37 = vmul.f32 %v235_v21, %v227_v27  ;;  %v243_v38 = vmul.f32 %v239_v22, %v228_v28 }
  0xe9   :  { %v270_v35 = vadd.f32 %v266_v30, %v265_v29  ;;  %v267_v36 = vadd.f32 %v264_v32, %v263_v31 }
  0xea   :  { %v249_v39 = vadd.f32 %v245_v34, %v244_v33  ;;  %v246_v40 = vadd.f32 %v243_v38, %v242_v37 }
  0xeb   :  { %271 = vadd.xlane.f32.xlu1 %v270_v35  ;;  %268 = vadd.xlane.f32.xlu0 %v267_v36 }
  0xef   :  { %250 = vadd.xlane.f32.xlu1 %v249_v39  ;;  %247 = vadd.xlane.f32.xlu0 %v246_v40 }
 0x178   :  { %v272_v24 = vpop.xlane.xlu1 %271  ;;  %v269_v26 = vpop.xlane.xlu0 %268 }
 0x179   :  { %331 = vrcp.f32 %v272_v24 }
 0x17a   :  { %333 = vrcp.f32 %v269_v26 }
 0x17c   :  { %v251_v42 = vpop.xlane.xlu1 %250  ;;  %v248_v45 = vpop.xlane.xlu0 %247 }
 0x183   :  { %v332_v41 = vpop.eup %331 }
 0x184   :  { %v334_v43 = vpop.eup %333  ;;  %v276_v44 = vmul.f32 %v332_v41, %v251_v42 }
 0x185   :  { %v274_v46 = vmul.f32 %v334_v43, %v248_v45 }
 0x186   :  { %vm278_vm1 = vcmp.ne.f32.partialorder %v276_v44, %v276_v44 }
 0x187   :  { %v280_v47 = vsel %vm278_vm1, 0.0, %v276_v44  ;;  %vm277_vm2 = vcmp.ne.f32.partialorder %v274_v46, %v274_v46 }
 0x188   :  { %vm282_vm3 = vcmp.eq.f32.partialorder %v280_v47, inf  ;;  %v279_v48 = vsel %vm277_vm2, 0.0, %v274_v46 }
 0x189   :  { %v284_v49 = vsel %vm282_vm3, 3.4028235e+38, %v280_v47  ;;  %vm281_vm4 = vcmp.eq.f32.partialorder %v279_v48, inf }
 0x18a   :  { %vm286_vm5 = vcmp.eq.f32.partialorder %v284_v49, -inf  ;;  %v283_v51 = vsel %vm281_vm4, 3.4028235e+38, %v279_v48 }
 0x18b   :  { %v288_v52 = vsel %vm286_vm5, -3.4028235e+38, %v284_v49  ;;  %vm285_vm6 = vcmp.eq.f32.partialorder %v283_v51, -inf }
 0x18c   :  { %v287_v54 = vsel %vm285_vm6, -3.4028235e+38, %v283_v51  ;;  %v292_v55 = vmul.f32 %v290_v50, %v288_v52 }
 0x18d   :  { %v291_v56 = vmul.f32 %v290_v50, %v287_v54 }
 0x18e   :  { %v296_v57 = vadd.f32 %v294_v53, %v292_v55 }
 0x18f   :  { %v295_v58 = vadd.f32 %v294_v53, %v291_v56 }
 0x190   :  { %298 = vst [vmem:[#allocation10 + $0x8] sm:$0xff] %v296_v57 }
 0x191   :  { %297 = vst [vmem:[#allocation10] sm:$0xff] %v295_v58 }
 0x192   :  { %424 = shalt.err (!%p421_p5)
}
 0x193   :  { %s425_s18 = scalar_lea.hbm %s563_s5, 256 }
 0x194   :  { %p426_p6 = scmp.ne.s32.totalorder %s563_s5, %s425_s18  ;;  %p429_p7 = scmp.lt.u32.totalorder %s425_s18, %s563_s5 }
 0x196   :  { %p431_p8 = pnand %p429_p7, %p426_p6 }
 0x198   :  { %434 = shalt.err (!%p431_p8)
}
 0x199   :  { %310 = dma.vmem_to_hbm [thread:$0]  %s305_s13, 256, %s563_s5, [#allocation4], %s445_s1, %s445_s1, %s446_s15  }
 0x19a   :  { %441 = dma.done.wait [#allocation4], 256  }
 0x19b   :  { %442 = vsyncadd [#allocation4], 4294967040 }
 0x19c   :  { %314 = vsyncpa [#allocation3], 1 }
 0x19d   :  { %315 = vsyncpa [#allocation7], 1 }
 0x19e   :  { %316 = vsyncpa [#allocation4], 1 }
 0x19f   :  { %317 = vsyncpa [#allocation5], 1 }

</bundles_post_ra>
